<compile_context>
chip_gen: v7x
topology: tpu7x:2x2x1
jax: 0.10.0
libtpu: 0.0.40
codegen_flags: <defaults>
</compile_context>

<pallas_src>
import math

import jax
import jax.numpy as jnp
from jax.experimental import pallas as pl
from jax.experimental.pallas import tpu as pltpu

_LANE = 128
_SUBLANE = 8


# --------------------------------------------------------------------------------------
# PE buffer construction (same math as the PyTorch module's __init__)
# --------------------------------------------------------------------------------------
def _build_pe(embed_dim: int, max_len: int = 500) -> jnp.ndarray:
    """Sinusoidal positional-encoding buffer, shape (1, max_len, embed_dim), float32."""
    assert embed_dim % 2 == 0, "sinusoidal PE builder requires an even embed_dim"
    position = jnp.arange(0, max_len, dtype=jnp.float32)[:, None]          # (max_len, 1)
    div_term = jnp.exp(
        jnp.arange(0, embed_dim, 2, dtype=jnp.float32)
        * (-math.log(10000.0) / embed_dim)
    )                                                                       # (embed_dim//2,)
    pe = jnp.zeros((max_len, embed_dim), dtype=jnp.float32)
    pe = pe.at[:, 0::2].set(jnp.sin(position * div_term))
    pe = pe.at[:, 1::2].set(jnp.cos(position * div_term))
    return pe[None, :, :]                                                   # (1, max_len, embed_dim)


def init_positional_encoding(embed_dim: int, max_len: int = 500, dtype=jnp.float32):
    """Module 'init': builds and caches every PE layout needed by the forward pass.

    Pre-casting to the activation dtype here removes the per-call slice/cast HBM pass.
    NOTE: adding in the activation dtype (e.g. bf16) is a deliberate, documented divergence
    from torch's f32 promotion; pass dtype=jnp.float32 to match torch exactly.
    """
    pe = _build_pe(embed_dim, max_len).astype(dtype)                        # (1, max_len, D)
    state = {"pe": pe, "embed_dim": embed_dim, "max_len": max_len}
    if embed_dim % _LANE != 0:
        if (max_len * embed_dim) % _LANE == 0:
            # Lane-dense flat view: first S*D/128 rows == pe[:, :S, :] whenever S*D % 128 == 0.
            state["pe_flat"] = pe.reshape(1, (max_len * embed_dim) // _LANE, _LANE)
        d_pad = -(-embed_dim // _LANE) * _LANE
        state["d_pad"] = d_pad
        state["pe_padded"] = jnp.pad(pe, ((0, 0), (0, 0), (0, d_pad - embed_dim)))
    return state


# --------------------------------------------------------------------------------------
# Kernel + pallas_call wrapper
# --------------------------------------------------------------------------------------
def _add_pe_kernel(x_ref, pe_ref, o_ref):
    # (B, rows, C) + (1, rows, C): single VPU add, pe broadcast over the folded batch dim.
    o_ref[...] = x_ref[...] + pe_ref[...]


def _vmem_plan():
    """Per-TPU-generation (target block bytes, scoped-VMEM ceiling)."""
    try:
        kind = jax.devices()[0].device_kind.lower()
    except Exception:  # pragma: no cover - defensive; fall through to conservative plan
        kind = ""
    if "v7" in kind:
        # 3.2 TB/s HBM -> bigger blocks amortize the ~0.35us/step overhead;
        # 64 MiB physical VMEM per TC caps how far we can push the scoped limit.
        return 4 << 20, 56 << 20
    if "v6" in kind:
        return 4 << 20, 100 << 20
    # v5e & unknown: default scoped VMEM is only 16 MiB -> conservative block size.
    return 2 << 20, 100 << 20


def _choose_row_tile(num_rows: int, batch: int, num_cols: int, itemsize: int,
                     block_budget: int) -> int:
    """Rows per block targeting `block_budget` bytes for the (B, rows, C) x/out block."""
    rows = max(1, block_budget // max(1, batch * num_cols * itemsize))
    rows = max(_SUBLANE, (rows // _SUBLANE) * _SUBLANE)          # sublane multiple, never < 8
    # Don't allocate wider blocks than the data needs (edge blocks are clipped/masked).
    rows = min(rows, ((num_rows + _SUBLANE - 1) // _SUBLANE) * _SUBLANE)
    return rows


def _add_pe_call(x3: jnp.ndarray, pe3: jnp.ndarray) -> jnp.ndarray:
    """x3: (B, R, C); pe3: (1, R_pe, C) with R_pe >= R.  Returns x3 + pe3[:, :R, :].

    Only the first ceil(R / row_tile) pe blocks are ever visited by the index_map, so the
    S-prefix of pe is addressed without any wrapper-level slice.
    """
    B, R, C = x3.shape
    itemsize = jnp.dtype(x3.dtype).itemsize
    block_budget, vmem_ceiling = _vmem_plan()
    row_tile = _choose_row_tile(R, B, C, itemsize, block_budget)
    n_tiles = pl.cdiv(R, row_tile)

    # Explicit scoped-VMEM budget derived from the actual block footprint:
    # x + out double-buffered, pe double-buffered, plus headroom.  Guards the very-wide-row
    # case where the forced 8-row minimum makes blocks exceed the nominal budget.
    x_blk = B * row_tile * C * itemsize
    pe_blk = row_tile * C * itemsize
    needed = 2 * 2 * x_blk + 2 * pe_blk + (4 << 20)
    vmem_limit = int(min(max(needed, 16 << 20), vmem_ceiling))

    return pl.pallas_call(
        _add_pe_kernel,
        out_shape=jax.ShapeDtypeStruct((B, R, C), x3.dtype),
        grid_spec=pl.GridSpec(
            grid=(n_tiles,),
            in_specs=[
                pl.BlockSpec((B, row_tile, C), lambda r: (0, r, 0)),   # x (batch folded in block)
                pl.BlockSpec((1, row_tile, C), lambda r: (0, r, 0)),   # pe: fetched once per tile
            ],
            out_specs=pl.BlockSpec((B, row_tile, C), lambda r: (0, r, 0)),
        ),
        compiler_params=pltpu.CompilerParams(
            # Single row axis marked parallel: on v7x the two TensorCores split rows (never
            # batch), preserving minimal pe traffic per core; neutral on v5e/v6e.
            dimension_semantics=("parallel",),
            vmem_limit_bytes=vmem_limit,
        ),
    )(x3, pe3)


# --------------------------------------------------------------------------------------
# Forward (matches PositionalEncoding.forward semantics)
# --------------------------------------------------------------------------------------
def positional_encoding_forward(x: jnp.ndarray, state) -> jnp.ndarray:
    """x: (B, S, D).  Returns x + pe[:, :S, :] using the buffers cached in `state`."""
    B, S, D = x.shape
    if D != state["embed_dim"]:
        raise ValueError(f"embed_dim mismatch: x has {D}, module was built with {state['embed_dim']}")
    if S > state["max_len"]:
        raise ValueError(f"sequence length {S} exceeds positional-encoding max_len {state['max_len']}")

    def buf(name):
        b = state[name]
        # Buffers are pre-cast at init; this lazy cast only fires on a dtype mismatch.
        return b if b.dtype == x.dtype else b.astype(x.dtype)

    if D % _LANE == 0:
        # Already lane-dense.
        return _add_pe_call(x, buf("pe"))

    if (S * D) % _LANE == 0 and "pe_flat" in state:
        # Lane-dense re-view: (B, S, D) -> (B, S*D/128, 128).  Valid because pe broadcasts
        # only over batch, so the flattened per-batch layouts of x and pe match.
        R = (S * D) // _LANE
        out = _add_pe_call(x.reshape(B, R, _LANE), buf("pe_flat"))
        return out.reshape(B, S, D)

    # Lane-sparse fallback: pad D up to a lane multiple (unmasked full-lane stores), then
    # strip the padding.  Rare path; pe_padded is cached at init so only x pays the pad.
    d_pad = state["d_pad"]
    x_pad = jnp.pad(x, ((0, 0), (0, 0), (0, d_pad - D)))
    out = _add_pe_call(x_pad, buf("pe_padded"))
    return out[:, :, :D]


# --------------------------------------------------------------------------------------
# Self-test
# --------------------------------------------------------------------------------------
if __name__ == "__main__":
    MAX_LEN = 500

    # Primary shape (batch, seq, embed_dim) consistent with the module's forward.
    B, S, D = 2, 8, 32
    key = jax.random.PRNGKey(0)
    x = jax.random.normal(key, (B, S, D), dtype=jnp.float32)

    state = init_positional_encoding(D, MAX_LEN, dtype=x.dtype)
    out = jax.block_until_ready(positional_encoding_forward(x, state))

    ref = x + _build_pe(D, MAX_LEN)[:, :S, :]
    assert out.shape == (B, S, D)
    assert jnp.allclose(out, ref, atol=1e-6, rtol=1e-6)

    # Exercise the other wrapper branches at tiny shapes:
    #   (2, 8, 128): D % 128 == 0 (already lane-dense)
    #   (2, 5, 32):  S*D % 128 != 0 -> padded-lane fallback
    for (b2, s2, d2) in [(2, 8, 128), (2, 5, 32)]:
        x2 = jax.random.normal(jax.random.PRNGKey(0), (b2, s2, d2), dtype=jnp.float32)
        st2 = init_positional_encoding(d2, MAX_LEN, dtype=x2.dtype)
        o2 = jax.block_until_ready(positional_encoding_forward(x2, st2))
        r2 = x2 + _build_pe(d2, MAX_LEN)[:, :s2, :]
        assert o2.shape == (b2, s2, d2)
        assert jnp.allclose(o2, r2, atol=1e-6, rtol=1e-6)

    print("KERNEL_OK")
</pallas_src>

<mosaic_0001>
module attributes {stable_mosaic.version = 11 : i64} {
  func.func @_add_pe_kernel(%arg0: i32, %arg1: memref<2x8x128xf32, #tpu.memory_space<vmem>>, %arg2: memref<1x8x128xf32, #tpu.memory_space<vmem>>, %arg3: memref<2x8x128xf32, #tpu.memory_space<vmem>>) attributes {dimension_semantics = [#tpu.dimension_semantics<parallel>], iteration_bounds = array<i64: 1>, scalar_prefetch = 0 : i64, scratch_operands = 0 : i64, tpu.core_type = #tpu.core_type<tc>, window_params = [{transform_indices = @transform_0, window_bounds = array<i64: 2, 8, 128>}, {transform_indices = @transform_1, window_bounds = array<i64: 1, 8, 128>}, {transform_indices = @transform_2, window_bounds = array<i64: 2, 8, 128>}]} {
    %c0 = arith.constant 0 : index
    %c0_0 = arith.constant 0 : index
    %c0_1 = arith.constant 0 : index
    %0 = vector.load %arg1[%c0, %c0_0, %c0_1] : memref<2x8x128xf32, #tpu.memory_space<vmem>>, vector<2x8x128xf32>
    %c0_2 = arith.constant 0 : index
    %c0_3 = arith.constant 0 : index
    %c0_4 = arith.constant 0 : index
    %1 = vector.load %arg2[%c0_2, %c0_3, %c0_4] : memref<1x8x128xf32, #tpu.memory_space<vmem>>, vector<1x8x128xf32>
    %2 = vector.broadcast %1 : vector<1x8x128xf32> to vector<2x8x128xf32>
    %3 = arith.addf %0, %2 : vector<2x8x128xf32>
    %c0_5 = arith.constant 0 : index
    %c0_6 = arith.constant 0 : index
    %c0_7 = arith.constant 0 : index
    %4 = vector.load %arg3[%c0_5, %c0_6, %c0_7] : memref<2x8x128xf32, #tpu.memory_space<vmem>>, vector<2x8x128xf32>
    tpu.vector_store %arg3[%c0_5, %c0_6, %c0_7], %3 {strides = array<i32>} : memref<2x8x128xf32, #tpu.memory_space<vmem>>, vector<2x8x128xf32>,
    return
  }
  func.func @transform_0(%arg0: i32) -> (i32, i32, i32) {
    %c0_i32 = arith.constant 0 : i32
    %c0_i32_0 = arith.constant 0 : i32
    %c0_i32_1 = arith.constant 0 : i32
    return %c0_i32, %arg0, %c0_i32_0 : i32, i32, i32
  }
  func.func @transform_1(%arg0: i32) -> (i32, i32, i32) {
    %c0_i32 = arith.constant 0 : i32
    %c0_i32_0 = arith.constant 0 : i32
    %c0_i32_1 = arith.constant 0 : i32
    return %c0_i32, %arg0, %c0_i32_0 : i32, i32, i32
  }
  func.func @transform_2(%arg0: i32) -> (i32, i32, i32) {
    %c0_i32 = arith.constant 0 : i32
    %c0_i32_0 = arith.constant 0 : i32
    %c0_i32_1 = arith.constant 0 : i32
    return %c0_i32, %arg0, %c0_i32_0 : i32, i32, i32
  }
}

</mosaic_0001>

<bundles_post_ra>
// kernel: tpu_custom_call.1
= control target key start
LH: loop header
LB: loop body
LE: loop exit
PB: predicated region body
PF: predicated region fallthrough
CT: control target
= control target key end

     0   :  { %7 = vsyncpa [#allocation4], 0  ;;  %s150_s0 = inlined_call_operand.vmem [shape: f32[2,2,128], index: 0, kind: input, shape index: {}]   ;;  %s151_s1 = inlined_call_operand.vmem [shape: f32[1,125,128], index: 1, kind: input, shape index: {}]   ;;  %s152_s2 = inlined_call_operand.hbm [shape: f32[2,2,128], index: 2, kind: output, shape index: {}]  }
   0x1   :  { %v25_v0 = vld [vmem:[%s150_s0] sm:$0x3]  ;;  %v27_v1 = vld [vmem:[%s150_s0 + $0x2] sm:$0x3] }
   0x2   :  { %26 = vst [vmem:[#allocation2] sm:$0x3] %v25_v0  ;;  %28 = vst [vmem:[#allocation2 + $0x8] sm:$0x3] %v27_v1  ;;  %v51_v2 = vld [vmem:[%s151_s1] sm:$0xff] }
   0x9   :  { %v49_v3 = vld [vmem:[#allocation2] sm:$0xff]  ;;  %v50_v4 = vld [vmem:[#allocation2 + $0x8] sm:$0xff] }
   0xa   :  { %v52_v5 = vadd.f32 %v51_v2, %v49_v3  ;;  %v53_v6 = vadd.f32 %v51_v2, %v50_v4 }
   0xc   :  { %54 = vst [vmem:[#allocation3] sm:$0xff] %v52_v5  ;;  %55 = vst [vmem:[#allocation3 + $0x8] sm:$0xff] %v53_v6 }
   0xd   :  { %60 = vsyncadd [#allocation4], 192  ;;  %s115_s15 = smov [#allocation3]   ;;  %s116_s17 = smov 128  }
   0xe   :  { %s77_s16 = sshll.u32 %s115_s15, 4  ;;  %84 = sst [smem:[#allocation6]] %s116_s17  ;;  %s78_s16 = int_to_ptr.vmem [resolvable:$true] %s77_s16 }
   0xf   :  { %s117_s18 = smov 32   ;;  %s118_s0 = smov 1  }
  0x10   :  { %86 = sst [smem:[#allocation6 + $0x1]] %s117_s18  ;;  %s119_s19 = smov 2  }
  0x11   :  { %88 = sst [smem:[#allocation6 + $0x2]] %s118_s0  ;;  %s120_s1 = smov [#allocation4]  }
  0x12   :  { %90 = sst [smem:[#allocation6 + $0x3]] %s117_s18  ;;  %s121_s20 = smov [#allocation5]  }
  0x13   :  { %92 = sst [smem:[#allocation6 + $0x4]] %s117_s18  ;;  %s122_s21 = smov 0  }
  0x14   :  { %94 = sst [smem:[#allocation6 + $0x5]] %s119_s19 }
  0x15   :  { %96 = dma.general %s78_s16, 64, %s152_s2, %s120_s1, %s121_s20, [#allocation6], %s122_s21, 0  }
  0x16   :  { %113 = dma.done.wait [#allocation4], 256  }
  0x17   :  { %114 = vsyncadd [#allocation4], 4294967040 }
  0x18   :  { %100 = vsyncpa [#allocation4], 1 }

</bundles_post_ra>
